<compile_context>
chip_gen: v7x
topology: tpu7x:2x2x1
jax: 0.10.0
libtpu: 0.0.40
codegen_flags: <defaults>
</compile_context>

<pallas_src>
import functools
import math

import jax
import jax.numpy as jnp
from jax.experimental import pallas as pl
from jax.experimental.pallas import tpu as pltpu

_LANE = 128
_ROW_TILE = 1024  # original rows per grid step (multiple of 1024)


def _cdiv(a, b):
    return -(-a // b)


def _ceil_to(v, m):
    return ((v + m - 1) // m) * m


def _vmem_capacity_bytes():
    """Physical VMEM per TensorCore; conservative fallback if introspection fails."""
    try:
        info = pltpu.get_tpu_info()
        for attr in ("vmem_capacity_bytes", "vmem_size_bytes", "vmem_bytes"):
            v = getattr(info, attr, None)
            if v:
                return int(v)
    except Exception:  # pragma: no cover
        pass
    return 64 * 1024 * 1024  # v7x per-TC VMEM (smallest of the targets)


def _pick_dim_tile(tmf, d, fold, budget_bytes, forced=None):
    """Pick the feature-axis tile so the double-buffered X + W2 tiles fit VMEM."""
    full_x = tmf * _ceil_to(d, _LANE) * 4
    full_w = _ceil_to(d, 8) * _ceil_to(fold, _LANE) * 4
    if forced is None and 2 * (full_x + full_w) <= budget_bytes:
        return d, 1
    if forced is not None:
        tk = _ceil_to(min(int(forced), d), _LANE)
    else:
        per_col = (tmf + _ceil_to(fold, _LANE)) * 4  # X + W2 bytes per feature col
        tk = (budget_bytes // (2 * per_col)) // _LANE * _LANE
        tk = max(_LANE, min(4096, tk))
    nk = _cdiv(d, tk)
    if nk == 1:
        tk = d
    return int(tk), int(nk)


def _logreg_kernel(x_ref, w2_ref, b_ref, o_ref, *, apply_sigmoid, nk, tk, valid_d):
    # x_ref : (tmf, tk)     folded-feature tile of X
    # w2_ref: (tk, fold)    block-diagonal weight tile
    # b_ref : (1, 1)        bias
    # o_ref : (tmf, fold)   per-row logits / probs for this row tile
    x = x_ref[...]
    if nk > 1 and valid_d % tk != 0:
        # Ragged feature tiling: zero the out-of-range columns of the last K
        # block so stale VMEM garbage (possibly NaN/Inf) cannot enter the sum.
        col = jax.lax.broadcasted_iota(jnp.int32, x.shape, 1) + pl.program_id(1) * tk
        x = jnp.where(col < valid_d, x, 0.0)

    part = jnp.dot(x, w2_ref[...], preferred_element_type=jnp.float32)

    def _finalize(acc):
        logits = acc + b_ref[...]
        if apply_sigmoid:
            # EUP approx reciprocal instead of a full f32 divide.
            return pl.reciprocal(1.0 + jnp.exp(-logits), approx=True)
        return logits

    if nk == 1:
        o_ref[...] = _finalize(part)
    else:
        k = pl.program_id(1)

        @pl.when(k == 0)
        def _():
            o_ref[...] = part

        @pl.when(k > 0)
        def _():
            o_ref[...] = o_ref[...] + part

        @pl.when(k == nk - 1)
        def _():
            o_ref[...] = _finalize(o_ref[...])


def logistic_reg_forward(x, w, b=None, y=None, *, max_dim_tile=None):
    """Pallas implementation of LogisticRegModule.forward.

    Args:
      x: [N, dim] features.
      w: [1, dim] nn.Linear weight (out_features=1).
      b: optional scalar / [1] bias (fit_intercept). None -> no bias.
      y: if None, returns sigmoid(logits) (inference path), else raw logits.
      max_dim_tile: optional cap on the feature tile (testing / tuning only).

    Returns:
      [N, 1] float32.
    """
    x = jnp.asarray(x, jnp.float32)
    n, dim = x.shape
    w = jnp.asarray(w, jnp.float32).reshape(1, dim)
    apply_sigmoid = y is None
    b_arr = (jnp.zeros((1, 1), jnp.float32) if b is None
             else jnp.asarray(b, jnp.float32).reshape(1, 1))

    # ---- Row folding for narrow feature dims (lane utilization, wider stores).
    fold = 1
    if dim < _LANE and _LANE % dim == 0 and n % (_LANE // dim) == 0:
        fold = _LANE // dim
    d = fold * dim
    nf = n // fold
    xv = x.reshape(nf, d)  # free row-major view of X, never a padded copy

    # ---- Block-diagonal weight: W2[c*dim + j, c] = w[j], so the per-row matvec
    #      becomes X_folded @ W2 on the MXU.
    w_row = w.reshape(dim)
    if fold == 1:
        w2 = w_row[:, None]                               # (dim, 1)
    else:
        eye = jnp.eye(fold, dtype=jnp.float32)
        w2 = (eye[:, None, :] * w_row[None, :, None]).reshape(d, fold)

    # ---- Row tiling (original rows per grid step).
    if n >= _ROW_TILE:
        tm = _ROW_TILE
        tmf = tm // fold
        gi = _cdiv(n, tm)            # ragged tail handled by a partial last block
        out_rows = gi * tmf
    else:
        tm = n                       # single full-array block for small N
        tmf = nf
        gi = 1
        out_rows = nf

    # ---- Feature (K) tiling so the double-buffered pipeline fits VMEM
    #      (lane/sublane-padded accounting; v7x-safe budget).
    vmem_cap = _vmem_capacity_bytes()
    pipe_budget = min((vmem_cap * 3) // 8, 48 * 2**20)
    o_tile = _ceil_to(tmf, 8) * _ceil_to(fold, _LANE) * 4
    b_tile = 8 * _LANE * 4
    tile_budget = max(4 * 2**20, pipe_budget - 2 * (o_tile + b_tile))
    tk, nk = _pick_dim_tile(tmf, d, fold, tile_budget, forced=max_dim_tile)
    d_pad = tk * nk
    if d_pad > d:
        # Tiny zero-pad of the (d, fold) weight only (never of X): keeps every
        # W2 K-block in bounds; OOB X columns are masked in-kernel.
        w2 = jnp.pad(w2, ((0, d_pad - d), (0, 0)))

    x_tile = tmf * _ceil_to(tk, _LANE) * 4
    w2_tile = _ceil_to(tk, 8) * _ceil_to(fold, _LANE) * 4
    accounted = 2 * (x_tile + w2_tile + o_tile + b_tile)   # double-buffered
    vmem_limit = int(min(vmem_cap, max(32 * 2**20, accounted + 16 * 2**20)))

    kernel = functools.partial(_logreg_kernel, apply_sigmoid=apply_sigmoid,
                               nk=nk, tk=tk, valid_d=d)

    out = pl.pallas_call(
        kernel,
        out_shape=jax.ShapeDtypeStruct((out_rows, fold), jnp.float32),
        grid_spec=pltpu.PrefetchScalarGridSpec(
            num_scalar_prefetch=0,
            grid=(gi, nk),
            in_specs=[
                pl.BlockSpec((tmf, tk), lambda i, k: (i, k)),    # X (folded view)
                pl.BlockSpec((tk, fold), lambda i, k: (k, 0)),   # block-diag weight
                pl.BlockSpec((1, 1), lambda i, k: (0, 0)),       # bias
            ],
            out_specs=pl.BlockSpec((tmf, fold), lambda i, k: (i, 0)),
        ),
        compiler_params=pltpu.CompilerParams(
            dimension_semantics=("parallel", "arbitrary"),
            vmem_limit_bytes=vmem_limit,
        ),
    )(xv, w2, b_arr)

    # Row-major flatten of the folded output is exactly per-row order; rows >= n
    # (from the partial last row block) are garbage and are sliced off here.
    return out.reshape(-1)[:n].reshape(n, 1)


if __name__ == "__main__":
    def make_inputs(key, n, dim):
        kx, kw, kb = jax.random.split(key, 3)
        bound = 1.0 / math.sqrt(dim)
        # Round inputs to bf16-representable values so the reference comparison
        # is insensitive to whether the MXU evaluates f32 matmuls in bf16 passes.
        as_f32 = lambda a: a.astype(jnp.bfloat16).astype(jnp.float32)
        x = as_f32(jax.random.normal(kx, (n, dim), jnp.float32))
        w = as_f32(jax.random.uniform(kw, (1, dim), jnp.float32, -bound, bound))
        b = as_f32(jax.random.uniform(kb, (1,), jnp.float32, -bound, bound))
        return x, w, b

    def run_case(key, n, dim, **kwargs):
        x, w, b = make_inputs(key, n, dim)
        ref_logits = x @ w.T + b[0]
        ref_probs = jax.nn.sigmoid(ref_logits)

        # Inference path (y is None): sigmoid(logits); approx reciprocal -> loose tol.
        probs = jax.block_until_ready(logistic_reg_forward(x, w, b, **kwargs))
        assert probs.shape == (n, 1), (n, dim, probs.shape)
        assert jnp.allclose(probs, ref_probs, atol=2e-3, rtol=2e-3), (n, dim, "sigmoid")

        # Training path (y provided): raw logits.
        y_dummy = jnp.zeros((n, 1), jnp.float32)
        logits = jax.block_until_ready(
            logistic_reg_forward(x, w, b, y=y_dummy, **kwargs))
        assert logits.shape == (n, 1), (n, dim, logits.shape)
        assert jnp.allclose(logits, ref_logits, atol=1e-4, rtol=1e-4), (n, dim, "logits")

    key = jax.random.PRNGKey(0)
    k0, k1, k2, k3 = jax.random.split(key, 4)

    # Module-scale demo shapes: N=16 samples, dim=32 features (folded, 1 block).
    run_case(k0, 16, 32)
    # Streaming path: lane-folded (dim=32 -> fold=4), ragged row tail.
    run_case(k1, 2500, 32)
    # Wide-feature path (fold=1), ragged row tail.
    run_case(k2, 1100, 160)
    # Feature(K)-tiled accumulator path (forced small dim tile).
    run_case(k3, 1100, 640, max_dim_tile=256)

    print("KERNEL_OK")
</pallas_src>

<mosaic_0001>
module attributes {stable_mosaic.version = 11 : i64} {
  func.func @_logreg_kernel(%arg0: i32, %arg1: i32, %arg2: memref<4x128xf32, #tpu.memory_space<vmem>>, %arg3: memref<128x4xf32, #tpu.memory_space<vmem>>, %arg4: memref<1x1xf32, #tpu.memory_space<vmem>>, %arg5: memref<4x4xf32, #tpu.memory_space<vmem>>) attributes {dimension_semantics = [#tpu.dimension_semantics<parallel>, #tpu.dimension_semantics<arbitrary>], iteration_bounds = array<i64: 1, 1>, scalar_prefetch = 0 : i64, scratch_operands = 0 : i64, tpu.core_type = #tpu.core_type<tc>, window_params = [{transform_indices = @transform_0, window_bounds = array<i64: 4, 128>}, {transform_indices = @transform_1, window_bounds = array<i64: 128, 4>}, {pipeline_mode = #tpu.pipeline_mode<synchronous>, transform_indices = @transform_2, window_bounds = array<i64: 1, 1>}, {transform_indices = @transform_3, window_bounds = array<i64: 4, 4>}]} {
    %c0 = arith.constant 0 : index
    %c0_0 = arith.constant 0 : index
    %0 = vector.load %arg2[%c0, %c0_0] : memref<4x128xf32, #tpu.memory_space<vmem>>, vector<4x128xf32>
    %c0_1 = arith.constant 0 : index
    %c0_2 = arith.constant 0 : index
    %1 = vector.load %arg3[%c0_1, %c0_2] : memref<128x4xf32, #tpu.memory_space<vmem>>, vector<128x4xf32>
    %cst = arith.constant dense<0.000000e+00> : vector<4x4xf32>
    %2 = tpu.matmul %0, %1, %cst {dimension_numbers = #tpu.dot_dimension_numbers<[1], [0], [0], [1], [0, 0, 1, 1], [], []>} : vector<4x128xf32>, vector<128x4xf32>, vector<4x4xf32> -> vector<4x4xf32>
    %c0_3 = arith.constant 0 : index
    %c0_4 = arith.constant 0 : index
    %3 = vector.load %arg4[%c0_3, %c0_4] : memref<1x1xf32, #tpu.memory_space<vmem>>, vector<1x1xf32>
    %4 = vector.broadcast %3 : vector<1x1xf32> to vector<4x4xf32>
    %5 = arith.addf %2, %4 : vector<4x4xf32>
    %cst_5 = arith.constant 0.000000e+00 : f32
    %6 = vector.broadcast %cst_5 : f32 to vector<4x4xf32>
    %7 = arith.subf %6, %5 : vector<4x4xf32>
    %8 = math.exp %7 : vector<4x4xf32>
    %cst_6 = arith.constant 1.000000e+00 : f32
    %9 = vector.broadcast %cst_6 : f32 to vector<4x4xf32>
    %10 = arith.addf %9, %8 : vector<4x4xf32>
    %11 = tpu.reciprocal %10 {approx = true} : vector<4x4xf32> -> vector<4x4xf32>
    %c0_7 = arith.constant 0 : index
    %c0_8 = arith.constant 0 : index
    %12 = vector.load %arg5[%c0_7, %c0_8] : memref<4x4xf32, #tpu.memory_space<vmem>>, vector<4x4xf32>
    tpu.vector_store %arg5[%c0_7, %c0_8], %11 {strides = array<i32>} : memref<4x4xf32, #tpu.memory_space<vmem>>, vector<4x4xf32>,
    return
  }
  func.func @transform_0(%arg0: i32, %arg1: i32) -> (i32, i32) {
    %c0_i32 = arith.constant 0 : i32
    return %arg0, %arg1 : i32, i32
  }
  func.func @transform_1(%arg0: i32, %arg1: i32) -> (i32, i32) {
    %c0_i32 = arith.constant 0 : i32
    %c0_i32_0 = arith.constant 0 : i32
    return %arg1, %c0_i32 : i32, i32
  }
  func.func @transform_2(%arg0: i32, %arg1: i32) -> (i32, i32) {
    %c0_i32 = arith.constant 0 : i32
    %c0_i32_0 = arith.constant 0 : i32
    %c0_i32_1 = arith.constant 0 : i32
    return %c0_i32, %c0_i32_0 : i32, i32
  }
  func.func @transform_3(%arg0: i32, %arg1: i32) -> (i32, i32) {
    %c0_i32 = arith.constant 0 : i32
    %c0_i32_0 = arith.constant 0 : i32
    return %arg0, %c0_i32 : i32, i32
  }
}

</mosaic_0001>

<bundles_post_ra>
// kernel: tpu_custom_call.1
= control target key start
LH: loop header
LB: loop body
LE: loop exit
PB: predicated region body
PF: predicated region fallthrough
CT: control target
= control target key end

     0   :  { %s337_s0 = inlined_call_operand.vmem [shape: f32[4,128], index: 0, kind: input, shape index: {}]   ;;  %s338_s1 = inlined_call_operand.vmem [shape: f32[128,4], index: 1, kind: input, shape index: {}]   ;;  %s339_s2 = inlined_call_operand.<no memory space> [shape: f32[1,1], index: 2, kind: input, shape index: {}]   ;;  %s340_s3 = inlined_call_operand.hbm [shape: f32[4,4], index: 3, kind: output, shape index: {}]  }
   0x1   :  { %v8_v0 = vstv %s339_s2 }
   0x2   :  { %9 = vst [vmem:[#allocation2] sm:$0x1] %v8_v0 }
   0x3   :  { %v18_v1 = vld [vmem:[%s338_s1] sm:$0xff]  ;;  %v19_v2 = vld [vmem:[%s338_s1 + $0x8] sm:$0xff]  ;;  %v20_v3 = vld [vmem:[%s338_s1 + $0x10] sm:$0xff]  ;;  %v246_v4 = vmov 0.0|0.0   ;;  %vm247_vm0 = vmmov 0   ;;  %v248_v7 = vmov 0.0  }
   0x4   :  { %188 = vmatprep.subr.bf16.mxu0 %v246_v4  ;;  %v189_v5 = vpack.c.bf16 %v19_v2, %v18_v1  ;;  %v21_v6 = vld [vmem:[%s338_s1 + $0x18] sm:$0xff]  ;;  %185 = vmatprep.mubr.msk.f32.mxu0 %vm247_vm0, %v248_v7  ;;  %v249_v8 = vmov 0   ;;  %v22_v10 = vld [vmem:[%s338_s1 + $0x20] sm:$0xff]  ;;  %v23_v11 = vld [vmem:[%s338_s1 + $0x28] sm:$0xff] }
   0x5   :  { %217 = vset.pattern.permute.xlu0 %v249_v8  ;;  %v192_v9 = vpack.c.bf16 %v21_v6, %v20_v3 }
   0x6   :  { %190 = vmatpush3.bf16.msra.mxu0 %v189_v5 }
   0x7   :  { %191 = vmatprep.subr.bf16.mxu0 %v246_v4 }
   0x9   :  { %v135_v12 = vld [vmem:[#allocation2] ss:$0 sm:$0xff] }
   0xa   :  { %41 = vperm.xlu0 %217, %v135_v12  }
   0xb   :  { %10 = vsyncpa [#allocation4], 0  ;;  %193 = vmatpush3.bf16.msra.mxu0 %v192_v9  ;;  %v195_v13 = vpack.c.bf16 %v23_v11, %v22_v10  ;;  %v24_v14 = vld [vmem:[%s338_s1 + $0x30] sm:$0xff]  ;;  %v25_v15 = vld [vmem:[%s338_s1 + $0x38] sm:$0xff]  ;;  %vm119_vm1 = vcmask 27648  }
   0xc   :  { %194 = vmatprep.subr.bf16.mxu0 %v246_v4  ;;  %v198_v16 = vpack.c.bf16 %v25_v15, %v24_v14  ;;  %v26_v17 = vld [vmem:[%s338_s1 + $0x40] sm:$0xff]  ;;  %v27_v18 = vld [vmem:[%s338_s1 + $0x48] sm:$0xff]  ;;  %v28_v20 = vld [vmem:[%s338_s1 + $0x50] sm:$0xff] }
   0xd   :  { %v201_v19 = vpack.c.bf16 %v27_v18, %v26_v17  ;;  %v29_v21 = vld [vmem:[%s338_s1 + $0x58] sm:$0xff]  ;;  %v30_v23 = vld [vmem:[%s338_s1 + $0x60] sm:$0xff]  ;;  %v31_v24 = vld [vmem:[%s338_s1 + $0x68] sm:$0xff] }
   0xe   :  { %v204_v22 = vpack.c.bf16 %v29_v21, %v28_v20  ;;  %v207_v25 = vpack.c.bf16 %v31_v24, %v30_v23  ;;  %v32_v26 = vld [vmem:[%s338_s1 + $0x70] sm:$0xff]  ;;  %v33_v27 = vld [vmem:[%s338_s1 + $0x78] sm:$0xff]  ;;  %v17_v29 = vld [vmem:[%s337_s0] sm:$0xf]  ;;  %s250_s1 = smov [#allocation3]  }
   0xf   :  { %196 = vmatpush3.bf16.msra.mxu0 %v195_v13  ;;  %v210_v28 = vpack.c.bf16 %v33_v27, %v32_v26  ;;  %s127_s20 = sshll.u32 %s250_s1, 4  ;;  %s128_s20 = int_to_ptr.vmem [resolvable:$true] %s127_s20 }
  0x10   :  { %197 = vmatprep.subr.bf16.mxu0 %v246_v4  ;;  %s222_s21 = scalar_lea.vmem %s128_s20, 64  ;;  %p227_p1 = scmp.lt.s32.totalorder %s128_s20, %s128_s20 }
  0x11   :  { %p223_p0 = scmp.ne.s32.totalorder %s128_s20, %s222_s21  ;;  %p228_p2 = scmp.lt.s32.totalorder %s222_s21, %s222_s21 }
  0x13   :  { %199 = vmatpush3.bf16.msra.mxu0 %v198_v16  ;;  %p229_p3 = por %p228_p2, %p227_p1 }
  0x14   :  { %200 = vmatprep.subr.bf16.mxu0 %v246_v4 }
  0x15   :  { %p230_p4 = pnand %p229_p3, %p223_p0 }
  0x17   :  { %202 = vmatpush3.bf16.msra.mxu0 %v201_v19 }
  0x18   :  { %203 = vmatprep.subr.bf16.mxu0 %v246_v4 }
  0x1b   :  { %205 = vmatpush3.bf16.msra.mxu0 %v204_v22 }
  0x1c   :  { %206 = vmatprep.subr.bf16.mxu0 %v246_v4 }
  0x1f   :  { %208 = vmatpush3.bf16.msra.mxu0 %v207_v25 }
  0x20   :  { %209 = vmatprep.subr.bf16.mxu0 %v246_v4 }
  0x23   :  { %211 = vmatpush3.bf16.msra.mxu0 %v210_v28 }
  0x26   :  { %186 = vmatmul.mubr.f32.vlgmr.msra.gmra.mrb[0].mxu0 %v17_v29 }
  0x89   :  { %v42_v30 = vpop.permute.xlu0 %41 }
  0xf9   :  { %v110_v31 = vpop.f32.mrb[0].mxu0 }
  0xfa   :  { %v111_v32 = vadd.f32 %v110_v31, %v42_v30  ;;  %v187_v33 = vpop.f32.mrb[1].mxu0 }
  0xfc   :  { %v114_v34 = vsub.f32 0.0, %v111_v32 }
  0xfe   :  { %v115_v35 = vmul.f32 1.442695, %v114_v34 }
 0x100   :  { %218 = vpow2.f32 %v115_v35 }
 0x10a   :  { %v219_v36 = vpop.eup %218 }
 0x10b   :  { %v117_v37 = vadd.f32 1.0, %v219_v36 }
 0x10d   :  { %220 = vrcp.f32 %v117_v37 }
 0x117   :  { %v221_v38 = vpop.eup %220 }
 0x118   :  { %120 = vst.msk [vmem:[#allocation3] sm:$0xf] %vm119_vm1, %v221_v38 }
 0x119   :  { %233 = shalt.err (!%p230_p4)
}
 0x11a   :  { %s234_s22 = scalar_lea.hbm %s340_s3, 64 }
 0x11b   :  { %p235_p5 = scmp.ne.s32.totalorder %s340_s3, %s234_s22  ;;  %p238_p6 = scmp.lt.u32.totalorder %s234_s22, %s340_s3 }
 0x11d   :  { %p240_p7 = pnand %p238_p6, %p235_p5 }
 0x11f   :  { %243 = shalt.err (!%p240_p7)
}
 0x120   :  { %130 = dma.vmem_to_hbm [thread:$0]  %s128_s20, 64, %s340_s3, [#allocation4]  }
 0x121   :  { %244 = dma.done.wait [#allocation4], 64  }
 0x122   :  { %245 = vsyncadd [#allocation4], 4294967232 }
 0x123   :  { %134 = vsyncpa [#allocation4], 1 }

</bundles_post_ra>
